<compile_context>
chip_gen: v5e
topology: v5e:2x2
jax: 0.10.0
libtpu: 0.0.40
codegen_flags: <defaults>
</compile_context>

<pallas_src>
import functools

import jax
import jax.numpy as jnp
from jax.experimental import pallas as pl
from jax.experimental.pallas import tpu as pltpu


def _normalize_kernel(scale_ref, bias_ref, x_ref, o_ref, *, br, sliced):
    # scale_ref / bias_ref: resident (Rp, 1) f32 per-row affine params
    #                       (constant block index -> fetched once, no streaming).
    # x_ref / o_ref:        (br, bl) lane-dense tiles of the (N*C, H*W) view.
    if sliced:
        i = pl.program_id(0)
        start = pl.multiple_of(i * br, br)      # br is a multiple of 8 here
        s = scale_ref[pl.ds(start, br), :]      # (br, 1)
        b = bias_ref[pl.ds(start, br), :]       # (br, 1)
    else:
        s = scale_ref[...]                      # row axis not tiled
        b = bias_ref[...]
    x = x_ref[...].astype(jnp.float32)
    o_ref[...] = (x * s + b).astype(o_ref.dtype)


def normalize(x, mean, std):
    """(x - mean[None,:,None,None]) / std[None,:,None,None], NCHW layout."""
    N, C, H, W = x.shape
    R, L = N * C, H * W

    itemsize = jnp.dtype(x.dtype).itemsize
    sub = {2: 16, 1: 32}.get(itemsize, 8)       # packed sublane count for x dtype

    # ---- generation-aware block / VMEM budget --------------------------------
    try:
        vmem_cap = int(pltpu.get_tpu_info().vmem_capacity_bytes)
    except Exception:
        vmem_cap = None
    if vmem_cap is not None and vmem_cap <= 80 * 1024 * 1024:
        # v7x-class: 64 MiB VMEM per TensorCore, ~3.2 TB/s HBM.
        target_bytes = 8 * 1024 * 1024
        vmem_limit = 40 * 1024 * 1024
    elif vmem_cap is not None:
        # v5e / v6e: 128 MiB physical VMEM.
        target_bytes = 8 * 1024 * 1024
        vmem_limit = 64 * 1024 * 1024
    else:
        # Unknown / query failed: conservative defaults, safe on every generation.
        target_bytes = 4 * 1024 * 1024
        vmem_limit = 32 * 1024 * 1024

    # Resident f32 params pad their last dim to 128 lanes in VMEM (~512 B/row,
    # x2 params x <=2 buffers) -> reserve that plus slack before sizing x blocks.
    param_vmem = 2 * 2 * (R + sub) * 128 * 4
    min_block = sub * 128 * itemsize
    block_cap = max(min_block, (vmem_limit - param_vmem - 2 * 1024 * 1024) // 4)

    total_bytes = R * L * itemsize
    # Keep >=2 grid programs for non-trivial tensors so the "parallel" axes can
    # feed both v7x TensorCores (no effect on single-TC v5e/v6e).
    if total_bytes > 2 * min_block:
        block_cap = min(block_cap, max(min_block, total_bytes // 2))
    block_bytes = min(target_bytes, block_cap)

    # ---- lane (last-dim) block: multiple of 128, or the full extent ----------
    min_rows = R if R <= sub else sub
    if L <= 128 or min_rows * L * itemsize <= block_bytes:
        bl = L                                   # full extent is always legal
    else:
        bl = (block_bytes // (min_rows * itemsize)) // 128 * 128
        bl = max(128, min(bl, (L // 128) * 128))  # partial last lane block is masked

    # ---- sublane (row) block: multiple of packed sublanes, or full extent ----
    rows_budget = block_bytes // max(1, bl * itemsize)
    rows_budget = max(min_rows, (rows_budget // sub) * sub)
    br = R if R <= rows_budget else rows_budget

    grid = (pl.cdiv(R, br), pl.cdiv(L, bl))
    sliced = grid[0] > 1                         # when True, br is a multiple of 8

    # ---- per-row affine params (divide hoisted out of the kernel) ------------
    #   (x - m) / s  ==  x * (1/s) + (-m/s)
    mean32 = jnp.asarray(mean, jnp.float32)
    std32 = jnp.asarray(std, jnp.float32)
    scale = 1.0 / std32
    bias = -mean32 * scale
    # Row r of x.reshape(N*C, H*W) has channel r % C -> tile over N.
    scale_rows = jnp.tile(scale, N)
    bias_rows = jnp.tile(bias, N)
    # Pad rows up to a multiple of br so in-kernel row slices stay in bounds
    # (padded rows only touch x's masked-out padding).
    Rp = grid[0] * br
    if Rp > R:
        pad = Rp - R
        scale_rows = jnp.concatenate([scale_rows, jnp.ones((pad,), jnp.float32)])
        bias_rows = jnp.concatenate([bias_rows, jnp.zeros((pad,), jnp.float32)])
    scale_rows = scale_rows.reshape(Rp, 1)
    bias_rows = bias_rows.reshape(Rp, 1)

    x2 = x.reshape(R, L)                         # free reshape for contiguous NCHW

    out2 = pl.pallas_call(
        functools.partial(_normalize_kernel, br=br, sliced=sliced),
        out_shape=jax.ShapeDtypeStruct((R, L), x.dtype),
        grid=grid,
        in_specs=[
            # Full-array blocks with a constant index map -> fetched once and
            # kept resident across the whole grid (no per-step param DMA).
            pl.BlockSpec((Rp, 1), lambda i, j: (0, 0)),   # scale (f32)
            pl.BlockSpec((Rp, 1), lambda i, j: (0, 0)),   # bias  (f32)
            pl.BlockSpec((br, bl), lambda i, j: (i, j)),  # x
        ],
        out_specs=pl.BlockSpec((br, bl), lambda i, j: (i, j)),
        compiler_params=pltpu.CompilerParams(
            dimension_semantics=("parallel", "parallel"),
            vmem_limit_bytes=vmem_limit,
        ),
    )(scale_rows, bias_rows, x2)

    return out2.reshape(N, C, H, W)


if __name__ == "__main__":
    key = jax.random.PRNGKey(0)
    N, C, H, W = 2, 4, 16, 16

    # Deterministic "parameters" (the module's __init__ takes mean/std lists).
    mean = jnp.array([0.485, 0.456, 0.406, 0.5], dtype=jnp.float32)
    std = jnp.array([0.229, 0.224, 0.225, 0.25], dtype=jnp.float32)

    x = jax.random.normal(key, (N, C, H, W), dtype=jnp.float32)

    out = jax.block_until_ready(normalize(x, mean, std))

    # Reference check in plain JAX (the mul+add refactor differs by ~1 ulp
    # from (x - m) / s, so tolerances are kept slightly loose).
    ref = (x - mean[None, :, None, None]) / std[None, :, None, None]
    assert out.shape == ref.shape and out.dtype == ref.dtype
    assert jnp.allclose(out, ref, atol=1e-5, rtol=1e-5)

    print("KERNEL_OK")
</pallas_src>

<mosaic_0001>
module attributes {stable_mosaic.version = 11 : i64} {
  func.func @_normalize_kernel(%arg0: i32, %arg1: i32, %arg2: memref<8x1xf32, #tpu.memory_space<vmem>>, %arg3: memref<8x1xf32, #tpu.memory_space<vmem>>, %arg4: memref<8x256xf32, #tpu.memory_space<vmem>>, %arg5: memref<8x256xf32, #tpu.memory_space<vmem>>) attributes {dimension_semantics = [#tpu.dimension_semantics<parallel>, #tpu.dimension_semantics<parallel>], iteration_bounds = array<i64: 1, 1>, scalar_prefetch = 0 : i64, scratch_operands = 0 : i64, tpu.core_type = #tpu.core_type<tc>, window_params = [{pipeline_mode = #tpu.pipeline_mode<synchronous>, transform_indices = @transform_0, window_bounds = array<i64: 8, 1>}, {pipeline_mode = #tpu.pipeline_mode<synchronous>, transform_indices = @transform_1, window_bounds = array<i64: 8, 1>}, {transform_indices = @transform_2, window_bounds = array<i64: 8, 256>}, {transform_indices = @transform_3, window_bounds = array<i64: 8, 256>}]} {
    %c0 = arith.constant 0 : index
    %c0_0 = arith.constant 0 : index
    %0 = vector.load %arg2[%c0, %c0_0] : memref<8x1xf32, #tpu.memory_space<vmem>>, vector<8x1xf32>
    %c0_1 = arith.constant 0 : index
    %c0_2 = arith.constant 0 : index
    %1 = vector.load %arg3[%c0_1, %c0_2] : memref<8x1xf32, #tpu.memory_space<vmem>>, vector<8x1xf32>
    %c0_3 = arith.constant 0 : index
    %c0_4 = arith.constant 0 : index
    %2 = vector.load %arg4[%c0_3, %c0_4] : memref<8x256xf32, #tpu.memory_space<vmem>>, vector<8x256xf32>
    %3 = vector.broadcast %0 : vector<8x1xf32> to vector<8x256xf32>
    %4 = arith.mulf %2, %3 : vector<8x256xf32>
    %5 = vector.broadcast %1 : vector<8x1xf32> to vector<8x256xf32>
    %6 = arith.addf %4, %5 : vector<8x256xf32>
    %c0_5 = arith.constant 0 : index
    %c0_6 = arith.constant 0 : index
    %7 = vector.load %arg5[%c0_5, %c0_6] : memref<8x256xf32, #tpu.memory_space<vmem>>, vector<8x256xf32>
    tpu.vector_store %arg5[%c0_5, %c0_6], %6 {strides = array<i32>} : memref<8x256xf32, #tpu.memory_space<vmem>>, vector<8x256xf32>,
    return
  }
  func.func @transform_0(%arg0: i32, %arg1: i32) -> (i32, i32) {
    %c0_i32 = arith.constant 0 : i32
    %c0_i32_0 = arith.constant 0 : i32
    %c0_i32_1 = arith.constant 0 : i32
    return %c0_i32, %c0_i32_0 : i32, i32
  }
  func.func @transform_1(%arg0: i32, %arg1: i32) -> (i32, i32) {
    %c0_i32 = arith.constant 0 : i32
    %c0_i32_0 = arith.constant 0 : i32
    %c0_i32_1 = arith.constant 0 : i32
    return %c0_i32, %c0_i32_0 : i32, i32
  }
  func.func @transform_2(%arg0: i32, %arg1: i32) -> (i32, i32) {
    %c0_i32 = arith.constant 0 : i32
    return %arg0, %arg1 : i32, i32
  }
  func.func @transform_3(%arg0: i32, %arg1: i32) -> (i32, i32) {
    %c0_i32 = arith.constant 0 : i32
    return %arg0, %arg1 : i32, i32
  }
}

</mosaic_0001>

<bundles_post_ra>
// kernel: tpu_custom_call.1
= control target key start
LH: loop header
LB: loop body
LE: loop exit
PB: predicated region body
PF: predicated region fallthrough
CT: control target
= control target key end

     0   :  { %v80_v1 = vmov 0   ;;  %s117_s0 = inlined_call_operand.vmem [shape: f32[8,1], index: 0, kind: input, shape index: {}]   ;;  %s118_s1 = inlined_call_operand.vmem [shape: f32[8,1], index: 1, kind: input, shape index: {}]   ;;  %s119_s2 = inlined_call_operand.vmem [shape: f32[8,256], index: 2, kind: input, shape index: {}]   ;;  %s120_s3 = inlined_call_operand.hbm [shape: f32[8,256], index: 3, kind: output, shape index: {}]  }
   0x1   :  { %v15_v0 = vld [vmem:[%s117_s0] sm:$0xff]  ;;  %53 = vset.pattern.permute.xlu0 %v80_v1 }
   0x2   :  { %8 = vsyncpa [#allocation3], 0  ;;  %21 = vperm.xlu0 %53, %v15_v0   ;;  %v16_v2 = vld [vmem:[%s118_s1] sm:$0xff]  ;;  %v18_v5 = vld [vmem:[%s119_s2 + $0x8] sm:$0xff]  ;;  %s81_s0 = smov [#allocation2]   ;;  %s42_s23 = sshll.u32 %s120_s3, 4  ;;  %s43_s23 = int_to_ptr.hbm [resolvable:$true] %s42_s23 }
   0x3   :  { %v17_v4 = vld [vmem:[%s119_s2] sm:$0xff]  ;;  %s40_s20 = sshll.u32 %s81_s0, 4  ;;  %s41_s20 = int_to_ptr.vmem [resolvable:$true] %s40_s20 }
   0xa   :  { %28 = vperm.xlu0 %53, %v16_v2  }
  0x74   :  { %v22_v3 = vpop.permute.xlu0 %21 }
  0x75   :  { %v24_v6 = vmul.f32 %v22_v3, %v17_v4  ;;  %v25_v7 = vmul.f32 %v22_v3, %v18_v5 }
  0x7c   :  { %v29_v8 = vpop.permute.xlu0 %28 }
  0x7d   :  { %v31_v9 = vadd.f32 %v29_v8, %v24_v6  ;;  %v32_v10 = vadd.f32 %v29_v8, %v25_v7 }
  0x7f   :  { %33 = vst [vmem:[#allocation2] sm:$0xff] %v31_v9 }
  0x80   :  { %34 = vst [vmem:[#allocation2 + $0x8] sm:$0xff] %v32_v10 }
  0x81   :  { %45 = dma.vmem_to_hbm [thread:$0]  %s41_s20, 256, %s43_s23, [#allocation3]  }
  0x82   :  { %78 = dma.done.wait [#allocation3], 256  }
  0x83   :  { %79 = vsyncadd [#allocation3], 4294967040 }
  0x84   :  { %50 = vsyncpa [#allocation3], 1 }

</bundles_post_ra>
